<compile_context>
chip_gen: v5e
topology: v5e:2x2
jax: 0.10.0
libtpu: 0.0.40
codegen_flags: <defaults>
</compile_context>

<pallas_src>
import jax
import jax.numpy as jnp
from jax.experimental import pallas as pl
from jax.experimental.pallas import tpu as pltpu


def _miner_dma_kernel(emb_ref, lab_ref, emb_out_ref, lab_out_ref, sem):
    # All refs live in HBM (memory_space=pl.ANY).  Issue both copies, then
    # wait: the two DMAs overlap and never touch VMEM or vector registers.
    emb_cp = pltpu.make_async_copy(emb_ref, emb_out_ref, sem.at[0])
    lab_cp = pltpu.make_async_copy(lab_ref, lab_out_ref, sem.at[1])
    emb_cp.start()
    lab_cp.start()
    emb_cp.wait()
    lab_cp.wait()


def contrastive_miner(embeddings: jax.Array, labels: jax.Array, dimensionality: int = 2):
    """Pallas implementation of ContrastiveMiner.forward.

    embeddings: (N, dimensionality) array
    labels:     (N,) array
    returns (embeddings.reshape(2, N//2, dimensionality), labels.reshape(2, N//2))
    """
    n = embeddings.shape[0]
    assert n % 2 == 0, "batch size must be even"
    half = n // 2
    d = dimensionality
    assert embeddings.shape == (n, d)
    assert labels.shape == (n,)

    # Free, metadata-only reshapes (this *is* the module's semantics); the
    # kernel then materializes the outputs with lane-dense HBM->HBM DMAs.
    emb3 = embeddings.reshape(2, half, d)
    lab2 = labels.reshape(2, half)

    emb_out, lab_out = pl.pallas_call(
        _miner_dma_kernel,
        out_shape=(
            jax.ShapeDtypeStruct((2, half, d), embeddings.dtype),
            jax.ShapeDtypeStruct((2, half), labels.dtype),
        ),
        in_specs=[
            pl.BlockSpec(memory_space=pl.ANY),
            pl.BlockSpec(memory_space=pl.ANY),
        ],
        out_specs=(
            pl.BlockSpec(memory_space=pl.ANY),
            pl.BlockSpec(memory_space=pl.ANY),
        ),
        scratch_shapes=[
            pltpu.SemaphoreType.DMA((2,)),
        ],
    )(emb3, lab2)

    return emb_out, lab_out


if __name__ == "__main__":
    key = jax.random.PRNGKey(0)
    k_emb, k_lab = jax.random.split(key)

    dimensionality = 2
    batch = 16  # N

    embeddings = jax.random.normal(k_emb, (batch, dimensionality), dtype=jnp.float32)
    labels = jax.random.randint(k_lab, (batch,), 0, 4, dtype=jnp.int32)

    emb_out, lab_out = contrastive_miner(embeddings, labels, dimensionality)
    jax.block_until_ready((emb_out, lab_out))

    # Reference semantics (plain JAX reshape, mirrors the PyTorch forward).
    emb_ref = embeddings.reshape(2, batch // 2, dimensionality)
    lab_ref = labels.reshape(2, batch // 2)

    assert emb_out.shape == (2, batch // 2, dimensionality)
    assert lab_out.shape == (2, batch // 2)
    assert emb_out.dtype == embeddings.dtype
    assert lab_out.dtype == labels.dtype
    assert jnp.array_equal(emb_out, emb_ref)
    assert jnp.array_equal(lab_out, lab_ref)

    print("KERNEL_OK")
</pallas_src>

<mosaic_0001>
module attributes {stable_mosaic.version = 11 : i64} {
  func.func @_miner_dma_kernel(%arg0: memref<2x8x2xf32, #tpu.memory_space<any>>, %arg1: memref<2x8xi32, #tpu.memory_space<any>>, %arg2: memref<2x8x2xf32, #tpu.memory_space<any>>, %arg3: memref<2x8xi32, #tpu.memory_space<any>>, %arg4: memref<2x!tpu.dma_semaphore, #tpu.memory_space<semaphore_mem>>) attributes {dimension_semantics = [], scalar_prefetch = 0 : i64, scratch_operands = 1 : i64, tpu.core_type = #tpu.core_type<tc>} {
    %c0_i32 = arith.constant 0 : i32
    %0 = tpu.memref_slice %arg4[%c0_i32] : memref<2x!tpu.dma_semaphore, #tpu.memory_space<semaphore_mem>> -> memref<1x!tpu.dma_semaphore, #tpu.memory_space<semaphore_mem>>
    %1 = tpu.memref_squeeze %0 : memref<1x!tpu.dma_semaphore, #tpu.memory_space<semaphore_mem>> -> memref<!tpu.dma_semaphore, #tpu.memory_space<semaphore_mem>>
    tpu.enqueue_dma source(%arg0 : memref<2x8x2xf32, #tpu.memory_space<any>>) target(%arg2 : memref<2x8x2xf32, #tpu.memory_space<any>>) target_semaphore(%1 : memref<!tpu.dma_semaphore, #tpu.memory_space<semaphore_mem>>)
    %c1_i32 = arith.constant 1 : i32
    %2 = tpu.memref_slice %arg4[%c1_i32] : memref<2x!tpu.dma_semaphore, #tpu.memory_space<semaphore_mem>> -> memref<1x!tpu.dma_semaphore, #tpu.memory_space<semaphore_mem>>
    %3 = tpu.memref_squeeze %2 : memref<1x!tpu.dma_semaphore, #tpu.memory_space<semaphore_mem>> -> memref<!tpu.dma_semaphore, #tpu.memory_space<semaphore_mem>>
    tpu.enqueue_dma source(%arg1 : memref<2x8xi32, #tpu.memory_space<any>>) target(%arg3 : memref<2x8xi32, #tpu.memory_space<any>>) target_semaphore(%3 : memref<!tpu.dma_semaphore, #tpu.memory_space<semaphore_mem>>)
    %c0_i32_0 = arith.constant 0 : i32
    %4 = tpu.memref_slice %arg4[%c0_i32_0] : memref<2x!tpu.dma_semaphore, #tpu.memory_space<semaphore_mem>> -> memref<1x!tpu.dma_semaphore, #tpu.memory_space<semaphore_mem>>
    %5 = tpu.memref_squeeze %4 : memref<1x!tpu.dma_semaphore, #tpu.memory_space<semaphore_mem>> -> memref<!tpu.dma_semaphore, #tpu.memory_space<semaphore_mem>>
    tpu.wait_dma2 semaphore(%5 : memref<!tpu.dma_semaphore, #tpu.memory_space<semaphore_mem>>) src(%arg0 : memref<2x8x2xf32, #tpu.memory_space<any>>) dst(%arg2 : memref<2x8x2xf32, #tpu.memory_space<any>>)
    %c1_i32_1 = arith.constant 1 : i32
    %6 = tpu.memref_slice %arg4[%c1_i32_1] : memref<2x!tpu.dma_semaphore, #tpu.memory_space<semaphore_mem>> -> memref<1x!tpu.dma_semaphore, #tpu.memory_space<semaphore_mem>>
    %7 = tpu.memref_squeeze %6 : memref<1x!tpu.dma_semaphore, #tpu.memory_space<semaphore_mem>> -> memref<!tpu.dma_semaphore, #tpu.memory_space<semaphore_mem>>
    tpu.wait_dma2 semaphore(%7 : memref<!tpu.dma_semaphore, #tpu.memory_space<semaphore_mem>>) src(%arg1 : memref<2x8xi32, #tpu.memory_space<any>>) dst(%arg3 : memref<2x8xi32, #tpu.memory_space<any>>)
    return
  }
}

</mosaic_0001>

<bundles_post_ra>
// kernel: tpu_custom_call.1
= control target key start
LH: loop header
LB: loop body
LE: loop exit
PB: predicated region body
PF: predicated region fallthrough
CT: control target
= control target key end

     0   :  { %s135_s0 = inlined_call_operand.vmem [shape: f32[2,8,2], index: 0, kind: input, shape index: {}]   ;;  %s136_s1 = inlined_call_operand.vmem [shape: s32[2,8], index: 1, kind: input, shape index: {}]   ;;  %s137_s2 = inlined_call_operand.vmem [shape: f32[2,8,2], index: 2, kind: output, shape index: {0}]   ;;  %s138_s3 = inlined_call_operand.hbm [shape: s32[2,8], index: 3, kind: output, shape index: {1}]  }
   0x1   :  { %v19_v0 = vld [vmem:[%s135_s0] sm:$0xff]  ;;  %v21_v1 = vld [vmem:[%s135_s0 + $0x8] sm:$0xff] }
   0x2   :  { %20 = vst [vmem:[%s137_s2] sm:$0xff] %v19_v0 }
   0x3   :  { %22 = vst [vmem:[%s137_s2 + $0x8] sm:$0xff] %v21_v1 }
   0x4   :  { %28 = vsyncadd [#allocation2], 256  ;;  %s37_s22 = sshll.u32 %s136_s1, 4  ;;  %s39_s25 = sshll.u32 %s138_s3, 4  ;;  %s38_s22 = int_to_ptr.vmem [resolvable:$true] %s37_s22  ;;  %s40_s25 = int_to_ptr.hbm [resolvable:$true] %s39_s25 }
   0x5   :  { %42 = dma.vmem_to_hbm [thread:$0]  %s38_s22, 32, %s40_s25, [#allocation2 + $0x1] }
   0x6   :  { %93 = dma.done.wait [#allocation2], 256 }
   0x7   :  { %94 = vsyncadd [#allocation2], 4294967040 }
   0x8   :  { %95 = dma.done.wait [#allocation2 + $0x1], 32 }
   0x9   :  { %96 = vsyncadd [#allocation2 + $0x1], 4294967264 }
   0xa   :  { %50 = vsyncmov [#allocation2] }
   0xd   :  { %s51_s0 = vpop.sfrf %50 }
   0xe   :  { %p67_p0 = scmp.ne.s32.totalorder %s51_s0, 0 }
  0x10   :  { %55 = shalt.err (%p67_p0)  }
  0x11   :  { %57 = vsyncmov [#allocation2 + $0x1] }
  0x14   :  { %s58_s2 = vpop.sfrf %57 }
  0x15   :  { %p68_p1 = scmp.ne.s32.totalorder %s58_s2, 0 }
  0x17   :  { %62 = shalt.err (%p68_p1)  }

</bundles_post_ra>
